<compile_context>
chip_gen: v5e
topology: v5e:2x2
jax: 0.10.0
libtpu: 0.0.40
codegen_flags: <defaults>
</compile_context>

<pallas_src>
import math
from functools import partial

import jax
import jax.numpy as jnp
from jax.experimental import pallas as pl
from jax.experimental.pallas import tpu as pltpu

# ----------------------------------------------------------------------------- config
CFG = dict(
    spec_channels=32, segment_size=8, inter_channels=16, hidden_channels=32,
    filter_channels=64, n_heads=2, n_layers=3, kernel_size=3, p_dropout=0.0,
    resblock="1", resblock_kernel_sizes=[3], resblock_dilation_sizes=[[1, 3, 5]],
    upsample_rates=[2, 2], upsample_initial_channel=32, upsample_kernel_sizes=[4, 4],
)

LRELU_SLOPE = 0.1
_MAX_ROWS = 512          # row-tile size once M exceeds it (fits VMEM on v5e/v6e/v7x)


# ----------------------------------------------------------------------------- fused matmul/conv kernel
def _fused_kernel(*refs, is_conv, K, dilation, t_out, has_bias, pre_act, act,
                  mode, has_res, has_ln, mask_pos, slope, eps):
    refs = list(refs)
    o_ref = refs.pop()                       # output ref is last
    x_ref = refs.pop(0)
    w_ref = refs.pop(0)
    b_ref = refs.pop(0) if has_bias else None
    g_ref = refs.pop(0) if mode == "gate" else None
    res_ref = refs.pop(0) if has_res else None
    if has_ln:
        lng_ref = refs.pop(0)
        lnb_ref = refs.pop(0)
    m_ref = refs.pop(0) if mask_pos is not None else None

    x = x_ref[0] if is_conv else x_ref[...]          # f32
    if pre_act == "lrelu":
        x = jnp.where(x >= 0, x, slope * x)

    if is_conv:
        acc = None
        for kk in range(K):                          # K-tap conv accumulation (no im2col)
            off = kk * dilation
            tap = x[off:off + t_out, :].astype(jnp.bfloat16)
            prod = jnp.dot(tap, w_ref[kk], preferred_element_type=jnp.float32)
            acc = prod if acc is None else acc + prod
    else:
        acc = jnp.dot(x.astype(jnp.bfloat16), w_ref[...],
                      preferred_element_type=jnp.float32)

    if has_bias:
        acc = acc + b_ref[...]

    if act == "relu":
        acc = jnp.maximum(acc, 0.0)
    elif act == "tanh":
        acc = jnp.tanh(acc)
    elif act == "lrelu":
        acc = jnp.where(acc >= 0, acc, slope * acc)
    elif act == "mish":
        acc = acc * jnp.tanh(jax.nn.softplus(acc))

    if mode == "gate":                               # fused_add_tanh_sigmoid_multiply
        h = acc.shape[-1] // 2
        g = g_ref[0]                                 # (1, 2h) broadcast over rows
        y = jnp.tanh(acc[:, :h] + g[:, :h]) * jax.nn.sigmoid(acc[:, h:] + g[:, h:])
    elif mode == "glu":
        h = acc.shape[-1] // 2
        y = acc[:, :h] * jax.nn.sigmoid(acc[:, h:])
    else:
        y = acc

    def _mask():
        return m_ref[0] if is_conv else m_ref[...]

    if mask_pos in ("pre_res", "both"):
        y = y * _mask()
    if has_res:
        y = y + (res_ref[0] if is_conv else res_ref[...])
    if has_ln:
        mu = jnp.mean(y, axis=-1, keepdims=True)
        var = jnp.mean(jnp.square(y - mu), axis=-1, keepdims=True)
        y = (y - mu) * jax.lax.rsqrt(var + eps) * lng_ref[...] + lnb_ref[...]
    if mask_pos in ("post", "both"):
        y = y * _mask()

    if is_conv:
        o_ref[0] = y
    else:
        o_ref[...] = y


def fused_linear(x, p, *, act="none", pre_act="none", slope=LRELU_SLOPE,
                 residual=None, ln=None, mask=None, mask_pos=None):
    """x: (..., Cin) f32, p['w']: (Cin, N) bf16, p['b']: (1, N) f32 (optional)."""
    lead = x.shape[:-1]
    cin = x.shape[-1]
    w, b = p["w"], p.get("b")
    n = w.shape[1]
    M = 1
    for d in lead:
        M *= int(d)
    x2 = x.reshape(M, cin)
    res2 = residual.reshape(M, n) if residual is not None else None
    msk2 = mask.reshape(M, 1) if mask is not None else None

    if M <= _MAX_ROWS:
        tm, Mp, gm = M, M, 1                     # full-extent block: no padding needed
    else:
        tm = _MAX_ROWS
        gm = pl.cdiv(M, tm)
        Mp = gm * tm
        x2 = jnp.pad(x2, ((0, Mp - M), (0, 0)))
        if res2 is not None:
            res2 = jnp.pad(res2, ((0, Mp - M), (0, 0)))
        if msk2 is not None:
            msk2 = jnp.pad(msk2, ((0, Mp - M), (0, 0)))

    inputs = [x2, w]
    specs = [pl.BlockSpec((tm, cin), lambda i: (i, 0)),
             pl.BlockSpec((cin, n), lambda i: (0, 0))]
    if b is not None:
        inputs.append(b)
        specs.append(pl.BlockSpec((1, n), lambda i: (0, 0)))
    if res2 is not None:
        inputs.append(res2)
        specs.append(pl.BlockSpec((tm, n), lambda i: (i, 0)))
    if ln is not None:
        inputs += [ln["g"], ln["b"]]
        specs += [pl.BlockSpec((1, n), lambda i: (0, 0)),
                  pl.BlockSpec((1, n), lambda i: (0, 0))]
    if mask_pos is not None:
        inputs.append(msk2)
        specs.append(pl.BlockSpec((tm, 1), lambda i: (i, 0)))

    out = pl.pallas_call(
        partial(_fused_kernel, is_conv=False, K=1, dilation=1, t_out=tm,
                has_bias=b is not None, pre_act=pre_act, act=act, mode="none",
                has_res=res2 is not None, has_ln=ln is not None,
                mask_pos=mask_pos, slope=slope, eps=1e-5),
        out_shape=jax.ShapeDtypeStruct((Mp, n), jnp.float32),
        grid=(gm,),
        in_specs=specs,
        out_specs=pl.BlockSpec((tm, n), lambda i: (i, 0)),
        compiler_params=pltpu.CompilerParams(dimension_semantics=("parallel",)),
    )(*inputs)
    if Mp != M:
        out = out[:M]
    return out.reshape(*lead, n)


def fused_conv(x, p, *, padding, dilation=1, act="none", pre_act="none",
               slope=LRELU_SLOPE, mode="none", gate_g=None, residual=None,
               ln=None, mask=None, mask_pos=None):
    """Stride-1 Conv1d.  x: (B, T, Cin); p['w']: (K, Cin, Cout) bf16; p['b']: (1, Cout)."""
    B, T, cin = x.shape
    w, b = p["w"], p.get("b")
    K, _, cout = w.shape
    n_out = cout // 2 if mode in ("gate", "glu") else cout
    pad_l, pad_r = padding
    xp = jnp.pad(x, ((0, 0), (pad_l, pad_r), (0, 0))) if (pad_l or pad_r) else x
    tp = T + pad_l + pad_r
    t_out = tp - dilation * (K - 1)

    inputs = [xp, w]
    specs = [pl.BlockSpec((1, tp, cin), lambda bi: (bi, 0, 0)),
             pl.BlockSpec((K, cin, cout), lambda bi: (0, 0, 0))]
    if b is not None:
        inputs.append(b)
        specs.append(pl.BlockSpec((1, cout), lambda bi: (0, 0)))
    if mode == "gate":
        inputs.append(gate_g)                                   # (B, 1, 2*n_out)
        specs.append(pl.BlockSpec((1, 1, 2 * n_out), lambda bi: (bi, 0, 0)))
    if residual is not None:
        rt = residual.shape[1]                                  # t_out or 1 (broadcast)
        inputs.append(residual)
        specs.append(pl.BlockSpec((1, rt, n_out), lambda bi: (bi, 0, 0)))
    if ln is not None:
        inputs += [ln["g"], ln["b"]]
        specs += [pl.BlockSpec((1, n_out), lambda bi: (0, 0)),
                  pl.BlockSpec((1, n_out), lambda bi: (0, 0))]
    if mask_pos is not None:
        inputs.append(mask)                                     # (B, t_out, 1)
        specs.append(pl.BlockSpec((1, t_out, 1), lambda bi: (bi, 0, 0)))

    return pl.pallas_call(
        partial(_fused_kernel, is_conv=True, K=K, dilation=dilation, t_out=t_out,
                has_bias=b is not None, pre_act=pre_act, act=act, mode=mode,
                has_res=residual is not None, has_ln=ln is not None,
                mask_pos=mask_pos, slope=slope, eps=1e-5),
        out_shape=jax.ShapeDtypeStruct((B, t_out, n_out), jnp.float32),
        grid=(B,),
        in_specs=specs,
        out_specs=pl.BlockSpec((1, t_out, n_out), lambda bi: (bi, 0, 0)),
        compiler_params=pltpu.CompilerParams(dimension_semantics=("parallel",)),
    )(*inputs)


# ----------------------------------------------------------------------------- attention kernel
def _attn_kernel(*refs, n_heads, dh, scale, causal, packed):
    refs = list(refs)
    o_ref = refs.pop()
    if packed:
        qkv_ref = refs.pop(0)
    else:
        q_ref = refs.pop(0)
        kv_ref = refs.pop(0)
    kmask_ref = None if causal else refs.pop(0)

    C = n_heads * dh
    if packed:
        xin = qkv_ref[0]                              # (T, 3C)
        q, k, v = xin[:, :C], xin[:, C:2 * C], xin[:, 2 * C:]
    else:
        q = q_ref[0]                                  # (Tq, C)
        kv = kv_ref[0]                                # (Tk, 2C)
        k, v = kv[:, :C], kv[:, C:]
    tq, tk = q.shape[0], k.shape[0]

    if causal:
        ri = jax.lax.broadcasted_iota(jnp.int32, (tq, tk), 0)
        ci = jax.lax.broadcasted_iota(jnp.int32, (tq, tk), 1)
        allow = ci <= ri
    else:
        allow = kmask_ref[0] > 0.5                    # (1, tk), broadcasts over query rows

    outs = []
    for h in range(n_heads):
        qh = (q[:, h * dh:(h + 1) * dh] * scale).astype(jnp.bfloat16)
        kh = k[:, h * dh:(h + 1) * dh].astype(jnp.bfloat16)
        vh = v[:, h * dh:(h + 1) * dh].astype(jnp.bfloat16)
        s = jax.lax.dot_general(qh, kh, (((1,), (1,)), ((), ())),
                                preferred_element_type=jnp.float32)
        s = jnp.where(allow, s, -1e4)
        s = s - jnp.max(s, axis=-1, keepdims=True)
        pexp = jnp.exp(s)
        pexp = pexp * pl.reciprocal(jnp.sum(pexp, axis=-1, keepdims=True), approx=True)
        outs.append(jnp.dot(pexp.astype(jnp.bfloat16), vh,
                            preferred_element_type=jnp.float32))
    o_ref[0] = jnp.concatenate(outs, axis=-1)


def pallas_attention(q_or_qkv, kv=None, *, key_mask=None, scale, n_heads, causal=False):
    packed = kv is None
    if packed:
        B, tq, c3 = q_or_qkv.shape
        C = c3 // 3
        tk = tq
    else:
        B, tq, C = q_or_qkv.shape
        tk = kv.shape[1]
    dh = C // n_heads

    inputs = [q_or_qkv]
    if packed:
        specs = [pl.BlockSpec((1, tq, 3 * C), lambda bi: (bi, 0, 0))]
    else:
        specs = [pl.BlockSpec((1, tq, C), lambda bi: (bi, 0, 0))]
        inputs.append(kv)
        specs.append(pl.BlockSpec((1, tk, 2 * C), lambda bi: (bi, 0, 0)))
    if not causal:
        inputs.append(key_mask)                       # (B, 1, Tk) f32
        specs.append(pl.BlockSpec((1, 1, tk), lambda bi: (bi, 0, 0)))

    return pl.pallas_call(
        partial(_attn_kernel, n_heads=n_heads, dh=dh, scale=scale,
                causal=causal, packed=packed),
        out_shape=jax.ShapeDtypeStruct((B, tq, C), jnp.float32),
        grid=(B,),
        in_specs=specs,
        out_specs=pl.BlockSpec((1, tq, C), lambda bi: (bi, 0, 0)),
        compiler_params=pltpu.CompilerParams(dimension_semantics=("parallel",)),
    )(*inputs)


# ----------------------------------------------------------------------------- small helpers
def sequence_mask(lengths, max_len):
    return (jnp.arange(max_len)[None, :] < lengths[:, None]).astype(jnp.float32)


def rotary_embed(x):
    # lucidrains RotaryEmbedding.rotate_queries_or_keys on (B, T, D), interleaved pairs
    B, T, D = x.shape
    inv_freq = 1.0 / (10000.0 ** (jnp.arange(0, D, 2, dtype=jnp.float32) / D))
    freqs = jnp.einsum("i,j->ij", jnp.arange(T, dtype=jnp.float32), inv_freq)
    freqs = jnp.repeat(freqs, 2, axis=-1)
    cos, sin = jnp.cos(freqs)[None], jnp.sin(freqs)[None]
    x1, x2 = x[..., ::2], x[..., 1::2]
    rot = jnp.stack([-x2, x1], axis=-1).reshape(B, T, D)
    return x * cos + rot * sin


def conv_transpose1d(x, p, *, stride, padding, pre_act="none", slope=LRELU_SLOPE):
    # polyphase-equivalent: one matmul (Cin -> K*Cout) then K strided scatter-adds (no zeros)
    B, T, _ = x.shape
    K, cout = p["k"], p["cout"]
    xw = fused_linear(x, {"w": p["w"]}, pre_act=pre_act, slope=slope)   # (B, T, K*Cout)
    xw = xw.reshape(B, T, K, cout)
    full = (T - 1) * stride + K
    y = jnp.zeros((B, full, cout), jnp.float32)
    for k in range(K):
        y = y.at[:, k:k + (T - 1) * stride + 1:stride, :].add(xw[:, :, k, :])
    t_out = (T - 1) * stride - 2 * padding + K
    return y[:, padding:padding + t_out, :] + p["b"]


def rand_slice_segments(x, lengths, seg, key):
    # TODO(synk): assumes lengths >= segment_size (same as commons.rand_slice_segments usage)
    B = x.shape[0]
    ids_max = (lengths - seg + 1).astype(jnp.float32)
    ids = (jax.random.uniform(key, (B,)) * ids_max).astype(jnp.int32)
    segs = jnp.stack([jax.lax.dynamic_slice_in_dim(x[b], ids[b], seg, axis=0)
                      for b in range(B)])
    return segs, ids


# ----------------------------------------------------------------------------- modules
def attn_block(p, x, *, n_heads, residual_ln, mask, key_mask=None, causal=False):
    # fused qkv matmul -> attention -> (o-proj + residual + LayerNorm + mask) in one kernel
    C = x.shape[-1]
    qkv = fused_linear(x, p["qkv"])
    o = pallas_attention(qkv, key_mask=key_mask, scale=1.0 / math.sqrt(C // n_heads),
                         n_heads=n_heads, causal=causal)
    return fused_linear(o, p["o"], residual=x, ln=residual_ln, mask=mask, mask_pos="post")


def encoder_forward(p, x, mask, kmask, g=None):
    # attentions.Encoder (TODO(synk): windowed relative attention -> absolute attention)
    x = x * mask
    nh, k = p["n_heads"], p["k"]
    for i in range(p["n_layers"]):
        if g is not None and i == p.get("cond_layer_idx", -1):
            x = (x + fused_linear(g, p["spk_emb"])) * mask
        x = attn_block(p["attn"][i], x, n_heads=nh, residual_ln=p["norm1"][i],
                       mask=mask, key_mask=kmask)
        h = fused_conv(x, p["ffn"][i]["c1"], padding=((k - 1) // 2, k // 2), act="relu",
                       mask=mask, mask_pos="post")
        x = fused_conv(h, p["ffn"][i]["c2"], padding=((k - 1) // 2, k // 2), residual=x,
                       ln=p["norm2"][i], mask=mask, mask_pos="both")
    return x


def fft_forward(p, x, mask, g=None):
    # attentions.FFT (causal self-attention, gated gin conditioning)
    B, T, H = x.shape
    nh, k = p["n_heads"], p["k"]
    g_all = fused_linear(g, p["cond_layer"]) if g is not None else None   # (B, 1, 2H*L)
    for i in range(p["n_layers"]):
        if g_all is not None:
            gl = g_all[:, :, i * 2 * H:(i + 1) * 2 * H]
            x = fused_conv(x, p["cond_pre"], padding=(0, 0), mode="gate", gate_g=gl)
        x = attn_block(p["attn"][i], x, n_heads=nh, residual_ln=p["norm0"][i],
                       mask=mask, causal=True)
        h = fused_conv(x, p["ffn"][i]["c1"], padding=(k - 1, 0), act="relu",
                       mask=mask, mask_pos="post")
        x = fused_conv(h, p["ffn"][i]["c2"], padding=(k - 1, 0), residual=x,
                       ln=p["norm1"][i], mask=mask, mask_pos="both")
    return x


def wn_forward(p, x, mask, g):
    # modules.WN: in-conv + gate fused into one kernel per layer
    B, T, H = x.shape
    k, n_layers = p["k"], p["n_layers"]
    g_all = fused_linear(g, p["cond"])                                    # (B, 1, 2H*L)
    out = None
    for i in range(n_layers):
        gl = g_all[:, :, i * 2 * H:(i + 1) * 2 * H]
        acts = fused_conv(x, p["in"][i], padding=((k - 1) // 2, (k - 1) // 2),
                          mode="gate", gate_g=gl)
        rs = fused_linear(acts, p["rs"][i])
        if i < n_layers - 1:
            x = (x + rs[:, :, :H]) * mask
            skip = rs[:, :, H:]
        else:
            skip = rs
        out = skip if out is None else out + skip
    return out * mask


def mel_style_forward(p, y_m, mask_bt):
    # modules.MelStyleEncoder (dropout omitted)
    SH = p["sh"]
    mask3 = mask_bt[:, :, None]
    x = fused_linear(y_m, p["spec1"], act="mish")
    x = fused_linear(x, p["spec2"], act="mish")
    x = fused_conv(x, p["glu"][0], padding=(2, 2), mode="glu", residual=x)
    x = fused_conv(x, p["glu"][1], padding=(2, 2), mode="glu", residual=x,
                   mask=mask3, mask_pos="post")
    kmask = mask_bt[:, None, :]
    qkv = fused_linear(x, p["qkv"])
    o = pallas_attention(qkv, key_mask=kmask, scale=1.0 / math.sqrt(SH), n_heads=2)
    x = fused_linear(o, p["fc_attn"], residual=x)
    x = fused_linear(x, p["fc"])
    denom = jnp.maximum(jnp.sum(mask_bt, axis=1, keepdims=True), 1.0)
    return jnp.sum(x * mask3, axis=1) / denom                            # (B, H)


def mrte_forward(p, ssl, ssl_mask, text, text_mask, text_kmask, ge):
    # TODO(synk): MRTE structure approximated from GPT-SoVITS mrte_model.
    H = ssl.shape[-1]
    nh = p["n_heads"]
    ssl_enc = fused_linear(ssl * ssl_mask, p["c_pre"], mask=ssl_mask, mask_pos="post")
    text_enc = fused_linear(text * text_mask, p["text_pre"], mask=text_mask, mask_pos="post")
    q = fused_linear(ssl_enc, p["cross"]["q"])
    kv = fused_linear(text_enc, p["cross"]["kv"])
    o = pallas_attention(q, kv, key_mask=text_kmask,
                         scale=1.0 / math.sqrt(H // nh), n_heads=nh)
    x = fused_linear(o, p["cross"]["o"], residual=ssl_enc)
    x = (x + ge) * ssl_mask
    return fused_linear(x, p["c_post"])


def text_encoder_forward(p, y, y_mask, y_kmask, token, token_lengths, ge):
    IC = CFG["inter_channels"]
    Tt = token.shape[1]
    t_mask_bt = sequence_mask(token_lengths, Tt)
    t_mask = t_mask_bt[:, :, None]
    t_kmask = t_mask_bt[:, None, :]
    tf = jnp.take(p["text_emb"], token, axis=0)
    tf = rotary_embed(tf)
    tf = encoder_forward(p["enc_text"], tf, t_mask, t_kmask, g=None)
    y = mrte_forward(p["mrte"], y, y_mask, tf, t_mask, t_kmask, ge)
    y = encoder_forward(p["enc_ssl"], y, y_mask, y_kmask, g=ge)
    stats = fused_linear(y, p["proj"], mask=y_mask, mask_pos="post")
    return y, stats[:, :, :IC], stats[:, :, IC:]


def posterior_forward(p, y, mask, g, key):
    IC = CFG["inter_channels"]
    x = fused_linear(y, p["pre"], mask=mask, mask_pos="post")
    x = wn_forward(p["enc"], x, mask, g)
    stats = fused_linear(x, p["proj"], mask=mask, mask_pos="post")
    m, logs = stats[:, :, :IC], stats[:, :, IC:]
    z = (m + jax.random.normal(key, m.shape) * jnp.exp(logs)) * mask
    return z, m, logs


def flow_forward(p, x, mask, g):
    half = CFG["inter_channels"] // 2
    for fp in p["flows"]:
        x0, x1 = x[:, :, :half], x[:, :, half:]
        h = fused_linear(x0, fp["pre"], mask=mask, mask_pos="post")
        h = fft_forward(fp["enc"], h, mask, g=g) + h
        m = fused_linear(h, fp["post"], mask=mask, mask_pos="post")   # zero-init, mean_only
        x1 = m + x1 * mask
        x = jnp.concatenate([x0, x1], axis=-1)
        x = jnp.flip(x, axis=-1)                                      # modules.Flip
    return x


def resblock1_forward(p, x):
    k = p["k"]
    for c1, c2, d in zip(p["c1"], p["c2"], p["d"]):
        xt = fused_conv(x, c1, padding=((k * d - d) // 2, (k * d - d) // 2), dilation=d,
                        pre_act="lrelu", slope=LRELU_SLOPE)
        x = fused_conv(xt, c2, padding=((k - 1) // 2, (k - 1) // 2),
                       pre_act="lrelu", slope=LRELU_SLOPE, residual=x)
    return x


def generator_forward(p, x, ge):
    rates, uks = CFG["upsample_rates"], CFG["upsample_kernel_sizes"]
    nk = len(CFG["resblock_kernel_sizes"])
    cond_g = fused_linear(ge, p["cond"])                                  # (B, 1, UIC)
    x = fused_conv(x, p["conv_pre"], padding=(3, 3), residual=cond_g)
    for i, (u, k) in enumerate(zip(rates, uks)):
        x = conv_transpose1d(x, p["ups"][i], stride=u, padding=(k - u) // 2,
                             pre_act="lrelu", slope=LRELU_SLOPE)
        xs = None
        for j in range(nk):
            r = resblock1_forward(p["resblocks"][i * nk + j], x)
            xs = r if xs is None else xs + r
        x = xs / nk
    return fused_conv(x, p["conv_post"], padding=(3, 3),
                      pre_act="lrelu", slope=0.01, act="tanh")            # F.leaky_relu default


def synthesizer_forward(params, speech_token, y, y_lengths, text_token, text_token_lengths, rng):
    y_btc = jnp.transpose(y, (0, 2, 1))                    # (B, T, SC)
    B, T, _ = y_btc.shape
    y_mask_bt = sequence_mask(y_lengths, T)
    y_mask = y_mask_bt[:, :, None]
    y_kmask = y_mask_bt[:, None, :]
    ge = mel_style_forward(params["ref_enc"], y_btc * y_mask, y_mask_bt)  # (B, H)
    ge_b1c = ge[:, None, :]
    speech_feat = jnp.take(params["embedding"], speech_token, axis=0)     # (B, T, H)
    speech_feat = rotary_embed(speech_feat)
    x, m_p, logs_p = text_encoder_forward(
        params["enc_p"], speech_feat, y_mask, y_kmask, text_token, text_token_lengths, ge_b1c)
    k1, k2 = jax.random.split(rng)
    z, m_q, logs_q = posterior_forward(params["enc_q"], y_btc, y_mask, ge_b1c, k1)
    z_p = flow_forward(params["flow"], z, y_mask, ge_b1c)
    z_slice, ids_slice = rand_slice_segments(z, y_lengths, CFG["segment_size"], k2)
    o = generator_forward(params["dec"], z_slice, ge_b1c)
    tr = lambda a: jnp.transpose(a, (0, 2, 1))             # back to torch (B, C, T)
    return (tr(o), ids_slice, tr(y_mask), tr(y_mask),
            (tr(z), tr(z_p), tr(m_p), tr(logs_p), tr(m_q), tr(logs_q)),
            tr(speech_feat))


# ----------------------------------------------------------------------------- parameter init
class PG:
    def __init__(self, key):
        self.key = key
        self.i = 0

    def take(self, shape, scale=0.05):
        self.i += 1
        return scale * jax.random.normal(jax.random.fold_in(self.key, self.i),
                                         shape, dtype=jnp.float32)


def init_linear(pg, din, dout, zero=False, bias=True):
    # weights stored pre-transposed (Cin, Cout) in bf16; bias pre-shaped (1, Cout) f32
    p = {"w": (jnp.zeros((din, dout), jnp.bfloat16) if zero
               else pg.take((din, dout)).astype(jnp.bfloat16))}
    if bias:
        p["b"] = jnp.zeros((1, dout), jnp.float32) if zero else pg.take((1, dout))
    return p


def init_conv(pg, cin, cout, k, bias=True):
    # conv weights stored pre-reshaped (K, Cin, Cout) in bf16 (hoisted from hot path)
    p = {"w": pg.take((k, cin, cout)).astype(jnp.bfloat16)}
    if bias:
        p["b"] = pg.take((1, cout))
    return p


def init_convT(pg, cin, cout, k):
    # conv-transpose weights stored pre-reshaped (Cin, K*Cout) for the polyphase matmul
    return {"w": pg.take((cin, k * cout)).astype(jnp.bfloat16),
            "b": pg.take((1, 1, cout)), "k": k, "cout": cout}


def init_ln(C):
    return {"g": jnp.ones((1, C), jnp.float32), "b": jnp.zeros((1, C), jnp.float32)}


def init_mha_self(pg, ch):
    return {"qkv": init_linear(pg, ch, 3 * ch), "o": init_linear(pg, ch, ch)}


def init_mha_cross(pg, ch):
    return {"q": init_linear(pg, ch, ch), "kv": init_linear(pg, ch, 2 * ch),
            "o": init_linear(pg, ch, ch)}


def init_ffn(pg, H, F, k):
    return {"c1": init_conv(pg, H, F, k), "c2": init_conv(pg, F, H, k)}


def init_encoder(pg, H, F, n_heads, n_layers, k, gin=0):
    p = {"n_heads": n_heads, "n_layers": n_layers, "k": k,
         "attn": [init_mha_self(pg, H) for _ in range(n_layers)],
         "norm1": [init_ln(H) for _ in range(n_layers)],
         "ffn": [init_ffn(pg, H, F, k) for _ in range(n_layers)],
         "norm2": [init_ln(H) for _ in range(n_layers)]}
    if gin:
        p["spk_emb"] = init_linear(pg, gin, H)
        p["cond_layer_idx"] = 2
    return p


def init_fft(pg, H, F, n_heads, n_layers, k, gin=0):
    p = {"n_heads": n_heads, "n_layers": n_layers, "k": k,
         "attn": [init_mha_self(pg, H) for _ in range(n_layers)],
         "norm0": [init_ln(H) for _ in range(n_layers)],
         "ffn": [init_ffn(pg, H, F, k) for _ in range(n_layers)],
         "norm1": [init_ln(H) for _ in range(n_layers)]}
    if gin:
        p["cond_layer"] = init_linear(pg, gin, 2 * H * n_layers)
        p["cond_pre"] = init_conv(pg, H, 2 * H, 1)
    return p


def init_wn(pg, H, k, n_layers, gin):
    return {"k": k, "n_layers": n_layers,
            "in": [init_conv(pg, H, 2 * H, k) for _ in range(n_layers)],
            "rs": [init_linear(pg, H, 2 * H if i < n_layers - 1 else H)
                   for i in range(n_layers)],
            "cond": init_linear(pg, gin, 2 * H * n_layers)}


def init_mel_style(pg, SC, H):
    SH = 128
    return {"sh": SH, "spec1": init_linear(pg, SC, SH), "spec2": init_linear(pg, SH, SH),
            "glu": [init_conv(pg, SH, 2 * SH, 5) for _ in range(2)],
            "qkv": init_linear(pg, SH, 3 * SH),
            "fc_attn": init_linear(pg, SH, SH), "fc": init_linear(pg, SH, H)}


def init_mrte(pg, H, NH):
    return {"n_heads": NH, "c_pre": init_linear(pg, H, H), "text_pre": init_linear(pg, H, H),
            "c_post": init_linear(pg, H, H), "cross": init_mha_cross(pg, H)}


def init_coupling(pg, IC, H, gin):
    half = IC // 2
    return {"pre": init_linear(pg, half, H),
            "enc": init_fft(pg, H, 768, 4, 1, 5, gin=gin),
            "post": init_linear(pg, H, half, zero=True)}   # post zero-init per module __init__


def init_generator(pg):
    IC, H = CFG["inter_channels"], CFG["hidden_channels"]
    UIC = CFG["upsample_initial_channel"]
    rates, uks = CFG["upsample_rates"], CFG["upsample_kernel_sizes"]
    rbk, rbd = CFG["resblock_kernel_sizes"], CFG["resblock_dilation_sizes"]
    p = {"conv_pre": init_conv(pg, IC, UIC, 7), "cond": init_linear(pg, H, UIC),
         "ups": [], "resblocks": []}
    for i, (u, k) in enumerate(zip(rates, uks)):
        p["ups"].append(init_convT(pg, UIC // 2 ** i, UIC // 2 ** (i + 1), k))
    ch = UIC
    for i in range(len(rates)):
        ch = UIC // 2 ** (i + 1)
        for k, d in zip(rbk, rbd):
            p["resblocks"].append({"k": k, "d": list(d),
                                   "c1": [init_conv(pg, ch, ch, k) for _ in d],
                                   "c2": [init_conv(pg, ch, ch, k) for _ in d]})
    p["conv_post"] = init_conv(pg, ch, 1, 7, bias=False)
    return p


def build_params(key):
    pg = PG(key)
    H, IC, FC = CFG["hidden_channels"], CFG["inter_channels"], CFG["filter_channels"]
    SC, NH, NL, K = CFG["spec_channels"], CFG["n_heads"], CFG["n_layers"], CFG["kernel_size"]
    return {
        "embedding": pg.take((4097, H)),
        "ref_enc": init_mel_style(pg, SC, H),
        "enc_p": {"text_emb": pg.take((250000, H)),
                  "enc_text": init_encoder(pg, H, FC, NH, NL, K, gin=0),
                  "enc_ssl": init_encoder(pg, H, FC, NH, NL, K, gin=H),
                  "mrte": init_mrte(pg, H, NH),
                  "proj": init_linear(pg, H, 2 * IC)},
        "enc_q": {"pre": init_linear(pg, SC, H),
                  "enc": init_wn(pg, H, 5, 16, gin=H),
                  "proj": init_linear(pg, H, 2 * IC)},
        "flow": {"flows": [init_coupling(pg, IC, H, gin=H) for _ in range(4)]},
        "dec": init_generator(pg),
    }


# ----------------------------------------------------------------------------- main
if __name__ == "__main__":
    key = jax.random.PRNGKey(0)
    ks = jax.random.split(key, 6)
    B, T, T_text = 2, 16, 8
    speech_token = jax.random.randint(ks[0], (B, T), 0, 4097, dtype=jnp.int32)
    y = jax.random.normal(ks[1], (B, CFG["spec_channels"], T), dtype=jnp.float32)
    y_lengths = jnp.array([16, 12], dtype=jnp.int32)
    text_token = jax.random.randint(ks[2], (B, T_text), 0, 250000, dtype=jnp.int32)
    text_token_lengths = jnp.array([8, 6], dtype=jnp.int32)

    params = build_params(jax.random.PRNGKey(42))
    out = synthesizer_forward(params, speech_token, y, y_lengths,
                              text_token, text_token_lengths, ks[3])
    out = jax.block_until_ready(out)

    o = out[0]
    expected_T = CFG["segment_size"] * CFG["upsample_rates"][0] * CFG["upsample_rates"][1]
    assert o.shape == (B, 1, expected_T), o.shape
    assert out[4][0].shape == (B, CFG["inter_channels"], T)          # z
    assert bool(jnp.all(jnp.isfinite(o)))
    print("KERNEL_OK")
</pallas_src>

<mosaic_0001>
module attributes {stable_mosaic.version = 11 : i64} {
  func.func @_fused_kernel(%arg0: i32, %arg1: memref<32x32xf32, #tpu.memory_space<vmem>>, %arg2: memref<32x128xbf16, #tpu.memory_space<vmem>>, %arg3: memref<1x128xf32, #tpu.memory_space<vmem>>, %arg4: memref<32x128xf32, #tpu.memory_space<vmem>>) attributes {dimension_semantics = [#tpu.dimension_semantics<parallel>], iteration_bounds = array<i64: 1>, scalar_prefetch = 0 : i64, scratch_operands = 0 : i64, tpu.core_type = #tpu.core_type<tc>, window_params = [{transform_indices = @transform_0, window_bounds = array<i64: 32, 32>}, {pipeline_mode = #tpu.pipeline_mode<synchronous>, transform_indices = @transform_1, window_bounds = array<i64: 32, 128>}, {pipeline_mode = #tpu.pipeline_mode<synchronous>, transform_indices = @transform_2, window_bounds = array<i64: 1, 128>}, {transform_indices = @transform_3, window_bounds = array<i64: 32, 128>}]} {
    %c0 = arith.constant 0 : index
    %c0_0 = arith.constant 0 : index
    %0 = vector.load %arg1[%c0, %c0_0] : memref<32x32xf32, #tpu.memory_space<vmem>>, vector<32x32xf32>
    %1 = arith.truncf %0 : vector<32x32xf32> to vector<32x32xbf16>
    %c0_1 = arith.constant 0 : index
    %c0_2 = arith.constant 0 : index
    %2 = vector.load %arg2[%c0_1, %c0_2] : memref<32x128xbf16, #tpu.memory_space<vmem>>, vector<32x128xbf16>
    %cst = arith.constant dense<0.000000e+00> : vector<32x128xf32>
    %3 = tpu.matmul %1, %2, %cst {dimension_numbers = #tpu.dot_dimension_numbers<[1], [0], [0], [1], [0, 0, 1, 1], [], []>} : vector<32x32xbf16>, vector<32x128xbf16>, vector<32x128xf32> -> vector<32x128xf32>
    %c0_3 = arith.constant 0 : index
    %c0_4 = arith.constant 0 : index
    %4 = vector.load %arg3[%c0_3, %c0_4] : memref<1x128xf32, #tpu.memory_space<vmem>>, vector<1x128xf32>
    %5 = vector.broadcast %4 : vector<1x128xf32> to vector<32x128xf32>
    %6 = arith.addf %3, %5 : vector<32x128xf32>
    %cst_5 = arith.constant 0.000000e+00 : f32
    %7 = vector.broadcast %cst_5 : f32 to vector<32x128xf32>
    %8 = arith.maximumf %6, %7 : vector<32x128xf32>
    %9 = vector.broadcast %cst_5 : f32 to vector<32x128xf32>
    %10 = arith.subf %6, %9 : vector<32x128xf32>
    %11 = arith.cmpf one, %10, %10 : vector<32x128xf32>
    %12 = vector.broadcast %cst_5 : f32 to vector<32x128xf32>
    %13 = arith.addf %6, %12 : vector<32x128xf32>
    %14 = math.absf %10 : vector<32x128xf32>
    %cst_6 = arith.constant 0.000000e+00 : f32
    %15 = vector.broadcast %cst_6 : f32 to vector<32x128xf32>
    %16 = arith.subf %15, %14 : vector<32x128xf32>
    %17 = math.exp %16 : vector<32x128xf32>
    %18 = math.log1p %17 : vector<32x128xf32>
    %19 = arith.addf %8, %18 : vector<32x128xf32>
    %20 = arith.select %11, %13, %19 : vector<32x128xi1>, vector<32x128xf32>
    %21 = math.tanh %20 : vector<32x128xf32>
    %22 = arith.mulf %6, %21 : vector<32x128xf32>
    %c0_7 = arith.constant 0 : index
    %c0_8 = arith.constant 0 : index
    %23 = vector.load %arg4[%c0_7, %c0_8] : memref<32x128xf32, #tpu.memory_space<vmem>>, vector<32x128xf32>
    tpu.vector_store %arg4[%c0_7, %c0_8], %22 {strides = array<i32>} : memref<32x128xf32, #tpu.memory_space<vmem>>, vector<32x128xf32>,
    return
  }
  func.func @transform_0(%arg0: i32) -> (i32, i32) {
    %c0_i32 = arith.constant 0 : i32
    %c0_i32_0 = arith.constant 0 : i32
    return %arg0, %c0_i32 : i32, i32
  }
  func.func @transform_1(%arg0: i32) -> (i32, i32) {
    %c0_i32 = arith.constant 0 : i32
    %c0_i32_0 = arith.constant 0 : i32
    %c0_i32_1 = arith.constant 0 : i32
    return %c0_i32, %c0_i32_0 : i32, i32
  }
  func.func @transform_2(%arg0: i32) -> (i32, i32) {
    %c0_i32 = arith.constant 0 : i32
    %c0_i32_0 = arith.constant 0 : i32
    %c0_i32_1 = arith.constant 0 : i32
    return %c0_i32, %c0_i32_0 : i32, i32
  }
  func.func @transform_3(%arg0: i32) -> (i32, i32) {
    %c0_i32 = arith.constant 0 : i32
    %c0_i32_0 = arith.constant 0 : i32
    return %arg0, %c0_i32 : i32, i32
  }
}

</mosaic_0001>

<bundles_post_ra>
// kernel: tpu_custom_call.1
= control target key start
LH: loop header
LB: loop body
LE: loop exit
PB: predicated region body
PF: predicated region fallthrough
CT: control target
= control target key end

     0   :  { %8 = vsyncpa [#allocation3], 0  ;;  %s405_s0 = inlined_call_operand.hbm [shape: f32[32,32], index: 0, kind: input, shape index: {}]   ;;  %s406_s1 = inlined_call_operand.hbm [shape: bf16[32,128], index: 1, kind: input, shape index: {}]   ;;  %s407_s2 = inlined_call_operand.vmem [shape: f32[1,128], index: 2, kind: input, shape index: {}]   ;;  %s408_s3 = inlined_call_operand.hbm [shape: f32[32,128], index: 3, kind: output, shape index: {}]  }
   0x1   :  { %9 = vsyncpa [#allocation6], 0 }
   0x2   :  { %10 = vsyncpa [#allocation4], 0  ;;  %s15_s14 = sshll.u32 %s405_s0, 4  ;;  %s328_s15 = smov [#allocation2]   ;;  %s16_s14 = int_to_ptr.hbm [resolvable:$true] %s15_s14 }
   0x3   :  { %s17_s16 = sshll.u32 %s328_s15, 4  ;;  %s28_s19 = sshll.u32 %s406_s1, 4  ;;  %s18_s16 = int_to_ptr.vmem [resolvable:$true] %s17_s16  ;;  %s29_s19 = int_to_ptr.hbm [resolvable:$true] %s28_s19 }
   0x4   :  { %s329_s20 = smov 128   ;;  %s330_s21 = smov 8  }
   0x5   :  { %23 = dma.hbm_to_vmem [thread:$0]  %s16_s14, 512, %s18_s16, [#allocation3], %s329_s20, %s329_s20, %s330_s21  }
   0x6   :  { %s331_s22 = smov [#allocation5]   ;;  %s332_s24 = smov 64  }
   0x7   :  { %s30_s23 = sshll.u32 %s331_s22, 4  ;;  %s333_s0 = smov 4   ;;  %s31_s23 = int_to_ptr.vmem [resolvable:$true] %s30_s23 }
   0x8   :  { %36 = dma.hbm_to_vmem [thread:$0]  %s29_s19, 256, %s31_s23, [#allocation6], %s332_s24, %s332_s24, %s333_s0  }
   0x9   :  { %322 = dma.done.wait [#allocation3], 512  }
   0xa   :  { %323 = vsyncadd [#allocation3], 4294966784 }
   0xb   :  { %324 = dma.done.wait [#allocation6], 256  }
   0xc   :  { %325 = vsyncadd [#allocation6], 4294967040  ;;  %v215_v0 = vld [vmem:[#allocation5 + $0x8] sm:$0xff]  ;;  %v214_v1 = vld [vmem:[#allocation5] sm:$0xff]  ;;  %vm74_vm0 = vcmask 261120   ;;  %s190_s29 = sshll.u32 %s408_s3, 4  ;;  %s191_s29 = int_to_ptr.hbm [resolvable:$true] %s190_s29 }
   0xd   :  { %v48_v2 = vld [vmem:[#allocation2] sm:$0xff]  ;;  %v49_v3 = vld [vmem:[#allocation2 + $0x8] sm:$0xff]  ;;  %87 = vmatpush.bf16.msra.mxu0 %v215_v0  ;;  %216 = vmatpush.bf16.msra.mxu1 %v215_v0  ;;  %v50_v4 = vld [vmem:[#allocation2 + $0x10] sm:$0xff] }
   0xe   :  { %v51_v5 = vld [vmem:[#allocation2 + $0x18] sm:$0xff]  ;;  %v52_v6 = vpack.c.bf16 %v49_v3, %v48_v2  ;;  %v225_v8 = vld [vmem:[%s407_s2] ss:$0 sm:$0xff]  ;;  %s334_s2 = smov [#allocation7]  }
   0xf   :  { %v53_v7 = vpack.c.bf16 %v51_v5, %v50_v4  ;;  %s188_s26 = sshll.u32 %s334_s2, 4  ;;  %s189_s26 = int_to_ptr.vmem [resolvable:$true] %s188_s26 }
  0x11   :  { %88 = vmatpush.bf16.msra.mxu0 %v214_v1  ;;  %217 = vmatpush.bf16.msra.mxu1 %v214_v1 }
  0x14   :  { %212 = vmatmul.msk.bf16.vlgmr.msra.gmra.mxu0 %vm74_vm0, %v52_v6  ;;  %213 = vmatmul.msk.bf16.vlgmr.msra.gmra.mxu1 %vm74_vm0, %v53_v7 }
  0x91   :  { %v90_v9 = vpop.f32.mrf.mxu0  ;;  %v95_v10 = vpop.f32.mrf.mxu1 }
  0x92   :  { %v367_v11 = vadd.f32 %v225_v8, %v90_v9  ;;  %v369_v12 = vadd.f32 %v225_v8, %v95_v10 }
  0x94   :  { %v112_v13 = vand.u32 2147483647, %v367_v11  ;;  %v114_v14 = vand.u32 2147483647, %v369_v12  ;;  %v100_v43 = vmax.f32 %v367_v11, 0.0  ;;  %v102_v51 = vmax.f32 %v369_v12, 0.0 }
  0x95   :  { %vm104_vm3 = vcmp.ne.f32.partialorder %v367_v11, %v367_v11  ;;  %vm106_vm4 = vcmp.ne.f32.partialorder %v369_v12, %v369_v12 }
  0x96   :  { %v116_v15 = vsub.f32 0.0, %v112_v13  ;;  %v118_v16 = vsub.f32 0.0, %v114_v14 }
  0x98   :  { %v120_v17 = vmul.f32 1.442695, %v116_v15  ;;  %v124_v18 = vmul.f32 1.442695, %v118_v16 }
  0x99   :  { %v92_v19 = vpop.f32.mrf.mxu0  ;;  %v97_v20 = vpop.f32.mrf.mxu1 }
  0x9a   :  { %226 = vpow2.f32 %v120_v17  ;;  %v373_v21 = vadd.f32 %v225_v8, %v92_v19  ;;  %v375_v22 = vadd.f32 %v225_v8, %v97_v20 }
  0x9b   :  { %228 = vpow2.f32 %v124_v18 }
  0x9c   :  { %v113_v23 = vand.u32 2147483647, %v373_v21  ;;  %v115_v24 = vand.u32 2147483647, %v375_v22  ;;  %v101_v2 = vmax.f32 %v373_v21, 0.0  ;;  %vm105_vm6 = vcmp.ne.f32.partialorder %v373_v21, %v373_v21 }
  0x9d   :  { %v103_v9 = vmax.f32 %v375_v22, 0.0  ;;  %vm107_vm8 = vcmp.ne.f32.partialorder %v375_v22, %v375_v22 }
  0x9e   :  { %v117_v25 = vsub.f32 0.0, %v113_v23  ;;  %v119_v26 = vsub.f32 0.0, %v115_v24 }
  0xa0   :  { %v227_v27 = vpop.eup %226  ;;  %v122_v28 = vmul.f32 1.442695, %v117_v25  ;;  %v126_v31 = vmul.f32 1.442695, %v119_v26 }
  0xa1   :  { %v229_v29 = vpop.eup %228  ;;  %v128_v30 = vadd.f32 1.0, %v227_v27  ;;  %v131_v32 = vmul.f32 -0.5, %v227_v27  ;;  %v134_v36 = vand.u32 2147483647, %v227_v27 }
  0xa2   :  { %v146_v33 = vadd.f32 1.0, %v229_v29  ;;  %230 = vpow2.f32 %v122_v28  ;;  %v149_v34 = vmul.f32 -0.5, %v229_v29  ;;  %v152_v39 = vand.u32 2147483647, %v229_v29 }
  0xa3   :  { %232 = vlog2.f32 %v128_v30  ;;  %v132_v35 = vadd.f32 1.0, %v131_v32  ;;  %vm135_vm1 = vcmp.lt.f32.partialorder %v134_v36, 0.0004427343 }
  0xa4   :  { %234 = vlog2.f32 %v146_v33  ;;  %v150_v37 = vadd.f32 1.0, %v149_v34  ;;  %vm153_vm2 = vcmp.lt.f32.partialorder %v152_v39, 0.0004427343 }
  0xa5   :  { %236 = vpow2.f32 %v126_v31  ;;  %v133_v45 = vmul.f32 %v227_v27, %v132_v35 }
  0xa6   :  { %v151_v49 = vmul.f32 %v229_v29, %v150_v37 }
  0xa8   :  { %v231_v38 = vpop.eup %230 }
  0xa9   :  { %v233_v40 = vpop.eup %232  ;;  %v137_v41 = vadd.f32 1.0, %v231_v38  ;;  %v140_v46 = vmul.f32 -0.5, %v231_v38  ;;  %v143_v59 = vand.u32 2147483647, %v231_v38 }
  0xaa   :  { %v235_v42 = vpop.eup %234  ;;  %v130_v44 = vmul.f32 0.6931472, %v233_v40 }
  0xab   :  { %v237_v47 = vpop.eup %236  ;;  %v148_v48 = vmul.f32 0.6931472, %v235_v42  ;;  %238 = vlog2.f32 %v137_v41  ;;  %v141_v57 = vadd.f32 1.0, %v140_v46  ;;  %vm144_vm5 = vcmp.lt.f32.partialorder %v143_v59, 0.0004427343 }
  0xac   :  { %v136_v50 = vsel %vm135_vm1, %v133_v45, %v130_v44  ;;  %v155_v52 = vadd.f32 1.0, %v237_v47  ;;  %v158_v55 = vmul.f32 -0.5, %v237_v47  ;;  %v161_v1 = vand.u32 2147483647, %v237_v47 }
  0xad   :  { %v164_v53 = vadd.f32 %v136_v50, %v100_v43  ;;  %v154_v54 = vsel %vm153_vm2, %v151_v49, %v148_v48  ;;  %v142_v0 = vmul.f32 %v231_v38, %v141_v57 }
  0xae   :  { %v166_v56 = vadd.f32 %v154_v54, %v102_v51  ;;  %240 = vlog2.f32 %v155_v52  ;;  %v159_v62 = vadd.f32 1.0, %v158_v55  ;;  %vm162_vm7 = vcmp.lt.f32.partialorder %v161_v1, 0.0004427343 }
  0xaf   :  { %v168_v58 = vsel %vm104_vm3, %v367_v11, %v164_v53 }
  0xb0   :  { %242 = vtanh.f32 %v168_v58  ;;  %v170_v60 = vsel %vm106_vm4, %v369_v12, %v166_v56  ;;  %v160_v7 = vmul.f32 %v237_v47, %v159_v62 }
  0xb1   :  { %v239_v61 = vpop.eup %238  ;;  %244 = vtanh.f32 %v170_v60 }
  0xb2   :  { %v139_v63 = vmul.f32 0.6931472, %v239_v61 }
  0xb4   :  { %v241_v3 = vpop.eup %240  ;;  %v145_v4 = vsel %vm144_vm5, %v142_v0, %v139_v63 }
  0xb5   :  { %v165_v5 = vadd.f32 %v145_v4, %v101_v2  ;;  %v157_v6 = vmul.f32 0.6931472, %v241_v3 }
  0xb6   :  { %v243_v8 = vpop.eup %242 }
  0xb7   :  { %v245_v10 = vpop.eup %244  ;;  %v176_v13 = vmul.f32 %v243_v8, %v367_v11  ;;  %v169_v14 = vsel %vm105_vm6, %v373_v21, %v165_v5  ;;  %v163_v15 = vsel %vm162_vm7, %v160_v7, %v157_v6 }
  0xb8   :  { %v178_v16 = vmul.f32 %v245_v10, %v369_v12  ;;  %246 = vtanh.f32 %v169_v14  ;;  %v167_v17 = vadd.f32 %v163_v15, %v103_v9 }
  0xb9   :  { %180 = vst [vmem:[#allocation7] sm:$0xff] %v176_v13 }
  0xba   :  { %182 = vst [vmem:[#allocation7 + $0x10] sm:$0xff] %v178_v16  ;;  %v171_v18 = vsel %vm107_vm8, %v375_v22, %v167_v17 }
  0xbb   :  { %248 = vtanh.f32 %v171_v18 }
  0xbe   :  { %v247_v19 = vpop.eup %246 }
  0xbf   :  { %v177_v20 = vmul.f32 %v247_v19, %v373_v21 }
  0xc1   :  { %v249_v11 = vpop.eup %248  ;;  %181 = vst [vmem:[#allocation7 + $0x8] sm:$0xff] %v177_v20 }
  0xc2   :  { %v179_v12 = vmul.f32 %v249_v11, %v375_v22 }
  0xc4   :  { %183 = vst [vmem:[#allocation7 + $0x18] sm:$0xff] %v179_v12 }
  0xc5   :  { %196 = dma.vmem_to_hbm [thread:$0]  %s189_s26, 512, %s191_s29, [#allocation4], %s329_s20, %s329_s20, %s330_s21  }
  0xc6   :  { %326 = dma.done.wait [#allocation4], 512  }
  0xc7   :  { %327 = vsyncadd [#allocation4], 4294966784 }
  0xc8   :  { %201 = vsyncpa [#allocation3], 1 }
  0xc9   :  { %202 = vsyncpa [#allocation6], 1 }
  0xca   :  { %203 = vsyncpa [#allocation4], 1 }

</bundles_post_ra>
